<compile_context>
chip_gen: v7x
topology: tpu7x:2x2x1
jax: 0.10.0
libtpu: 0.0.40
codegen_flags: <defaults>
</compile_context>

<pallas_src>
import functools
import math

import jax
import jax.numpy as jnp
from jax.experimental import pallas as pl
from jax.experimental.pallas import tpu as pltpu


# --------------------------------------------------------------------------
# Kernel 1: LayerNorm + Q/K/V projections (one batch element per grid step).
# --------------------------------------------------------------------------
def _ln_qkv_kernel(x_ref, gamma_ref, beta_ref,
                   wq_ref, bq_ref, wk_ref, bk_ref, wv_ref, bv_ref,
                   ln_ref, q_ref, k_ref, v_ref):
    x = x_ref[...].astype(jnp.float32)                        # (S, E)

    gamma = gamma_ref[0, :]
    beta = beta_ref[0, :]
    mu = jnp.mean(x, axis=-1, keepdims=True)
    var = jnp.mean((x - mu) ** 2, axis=-1, keepdims=True)
    ln = (x - mu) * jax.lax.rsqrt(var + 1e-5) * gamma + beta  # (S, E) f32
    ln_ref[...] = ln.astype(ln_ref.dtype)

    # bf16 MXU operands, f32 accumulation (weights arrive bf16 from wrapper).
    ln_bf = ln.astype(jnp.bfloat16)
    q = jnp.dot(ln_bf, wq_ref[...], preferred_element_type=jnp.float32) + bq_ref[0, :]
    k = jnp.dot(ln_bf, wk_ref[...], preferred_element_type=jnp.float32) + bk_ref[0, :]
    v = jnp.dot(ln_bf, wv_ref[...], preferred_element_type=jnp.float32) + bv_ref[0, :]
    q_ref[...] = q.astype(q_ref.dtype)                        # bf16 out
    k_ref[...] = k.astype(k_ref.dtype)
    v_ref[...] = v.astype(v_ref.dtype)


# --------------------------------------------------------------------------
# Kernel 2: attention (one q tile) + out-proj + residual + FFN + residual.
# --------------------------------------------------------------------------
def _attn_ffn_kernel(q_ref, k_ref, v_ref, ln_ref,
                     wo_ref, bo_ref, w1_ref, b1_ref, w2_ref, b2_ref,
                     out_ref, *, num_heads, head_dim):
    tq, embed_dim = q_ref.shape
    s_kv = k_ref.shape[0]
    scale = 1.0 / math.sqrt(head_dim)

    qh = q_ref[...].reshape(tq, num_heads, head_dim)          # bf16
    kh = k_ref[...].reshape(s_kv, num_heads, head_dim)        # bf16
    vh = v_ref[...].reshape(s_kv, num_heads, head_dim)        # bf16

    # Scores only for this q tile: (H, TQ, S_kv) — never the full (H, S, S).
    scores = jnp.einsum('qhd,khd->hqk', qh, kh,
                        preferred_element_type=jnp.float32) * scale
    m = jnp.max(scores, axis=-1, keepdims=True)
    p = jnp.exp(scores - m)
    denom = jnp.sum(p, axis=-1, keepdims=True)
    p = p * pl.reciprocal(denom, approx=True)                 # EUP slot, not VALU divide
    ctx = jnp.einsum('hqk,khd->qhd', p.astype(jnp.bfloat16), vh,
                     preferred_element_type=jnp.float32)
    ctx = ctx.reshape(tq, embed_dim)

    # Output projection + residual with the normalized query.
    attn = jnp.dot(ctx.astype(jnp.bfloat16), wo_ref[...],
                   preferred_element_type=jnp.float32) + bo_ref[0, :]
    y = attn + ln_ref[...].astype(jnp.float32)                # (TQ, E) f32

    # Feed-forward: Linear -> exact-erf GELU (kept f32; v5e has no bf16 VPU/EUP)
    # -> Linear, then residual.
    h1 = jnp.dot(y.astype(jnp.bfloat16), w1_ref[...],
                 preferred_element_type=jnp.float32) + b1_ref[0, :]
    h1 = jax.nn.gelu(h1, approximate=False)
    ff = jnp.dot(h1.astype(jnp.bfloat16), w2_ref[...],
                 preferred_element_type=jnp.float32) + b2_ref[0, :]

    out_ref[...] = (ff + y).astype(out_ref.dtype)


# --------------------------------------------------------------------------
# Wrapper
# --------------------------------------------------------------------------
def _const_spec(arr):
    nd = arr.ndim
    return pl.BlockSpec(arr.shape, lambda *args, _nd=nd: (0,) * _nd)


def _pick_q_tile(seq_len, max_tile=256):
    if seq_len <= max_tile:
        return seq_len
    for t in (256, 128, 64, 32, 16, 8):
        if seq_len % t == 0:
            return t
    return seq_len


def _vmem_limit(block_bytes, live_bytes=0):
    # double-buffered pipeline blocks + live intermediates + headroom,
    # clamped to a value safe on all generations (v7x has 64 MiB physical).
    est = 2 * block_bytes + live_bytes + (4 << 20)
    return int(min(max(est, 32 << 20), 56 << 20))


def attention_wrapper_forward(query, params, *, num_heads):
    """query: (B, S, E) batch_first. Self-attention path (is_cross_attention=False)."""
    B, S, E = query.shape
    F = params['w1'].shape[0]
    H = num_heads
    Dh = E // H
    wdt = jnp.bfloat16

    # ---- weight prep (layout plumbing in the wrapper, not the kernel) -----
    gamma = params['ln_gamma'].reshape(1, E).astype(jnp.float32)
    beta = params['ln_beta'].reshape(1, E).astype(jnp.float32)
    in_w = params['in_proj_w']                       # (3E, E) rows = [q; k; v]
    in_b = params['in_proj_b']
    wq_t = in_w[:E, :].T.astype(wdt)                 # (E, E)
    wk_t = in_w[E:2 * E, :].T.astype(wdt)
    wv_t = in_w[2 * E:, :].T.astype(wdt)
    bq = in_b[:E].reshape(1, E).astype(jnp.float32)
    bk = in_b[E:2 * E].reshape(1, E).astype(jnp.float32)
    bv = in_b[2 * E:].reshape(1, E).astype(jnp.float32)
    wo_t = params['out_proj_w'].T.astype(wdt)        # (E, E)
    bo = params['out_proj_b'].reshape(1, E).astype(jnp.float32)
    w1_t = params['w1'].T.astype(wdt)                # (E, F)
    b1 = params['b1'].reshape(1, F).astype(jnp.float32)
    w2_t = params['w2'].T.astype(wdt)                # (F, E)
    b2 = params['b2'].reshape(1, E).astype(jnp.float32)

    # ======================= Kernel 1: LN + Q/K/V ==========================
    k1_block_bytes = (S * E * 4                      # x block (f32)
                      + 2 * E * 4                    # gamma, beta
                      + 3 * E * E * 2 + 3 * E * 4    # bf16 weights + f32 biases
                      + S * E * 4 + 3 * S * E * 2)   # ln out + q/k/v outs
    vmem1 = _vmem_limit(k1_block_bytes)
    cost1 = pl.CostEstimate(
        flops=int(6 * B * S * E * E),
        transcendentals=int(B * S),
        bytes_accessed=int(B * S * E * 4 + 3 * E * E * 2
                           + B * S * E * 4 + 3 * B * S * E * 2))

    seq_spec = pl.BlockSpec((pl.Squeezed(), S, E), lambda b: (b, 0, 0))
    ln, q, k, v = pl.pallas_call(
        _ln_qkv_kernel,
        out_shape=(jax.ShapeDtypeStruct((B, S, E), jnp.float32),
                   jax.ShapeDtypeStruct((B, S, E), wdt),
                   jax.ShapeDtypeStruct((B, S, E), wdt),
                   jax.ShapeDtypeStruct((B, S, E), wdt)),
        grid_spec=pltpu.PrefetchScalarGridSpec(
            num_scalar_prefetch=0,
            grid=(B,),
            in_specs=[
                seq_spec,
                _const_spec(gamma), _const_spec(beta),
                _const_spec(wq_t), _const_spec(bq),
                _const_spec(wk_t), _const_spec(bk),
                _const_spec(wv_t), _const_spec(bv),
            ],
            out_specs=(seq_spec, seq_spec, seq_spec, seq_spec),
        ),
        compiler_params=pltpu.CompilerParams(
            dimension_semantics=("parallel",),
            vmem_limit_bytes=vmem1),
        cost_estimate=cost1,
    )(query, gamma, beta, wq_t, bq, wk_t, bk, wv_t, bv)

    # ================= Kernel 2: attention + FFN per q tile ================
    TQ = _pick_q_tile(S)
    NQ = S // TQ

    k2_block_bytes = (TQ * E * 2 + 2 * S * E * 2 + TQ * E * 4   # q tile, k, v, ln tile
                      + E * E * 2 + 2 * E * F * 2               # wo, w1, w2 (bf16)
                      + (3 * E + F) * 4                         # biases
                      + TQ * E * 4)                             # out tile
    k2_live_bytes = 2 * H * TQ * S * 4 + TQ * F * 4             # scores/p + h1 slabs
    vmem2 = _vmem_limit(k2_block_bytes, k2_live_bytes)
    cost2 = pl.CostEstimate(
        flops=int(B * (4 * S * S * E + 2 * S * E * E + 4 * S * E * F)),
        transcendentals=int(B * (H * S * S + S * F)),
        bytes_accessed=int(NQ * 2 * B * S * E * 2               # k, v re-read per q tile
                           + B * S * E * (2 + 4)                # q + ln
                           + (E * E + 2 * E * F) * 2            # weights
                           + B * S * E * 4))                    # output

    qtile_spec = pl.BlockSpec((pl.Squeezed(), TQ, E), lambda b, qi: (b, qi, 0))
    kvfull_spec = pl.BlockSpec((pl.Squeezed(), S, E), lambda b, qi: (b, 0, 0))

    kernel2 = functools.partial(_attn_ffn_kernel, num_heads=H, head_dim=Dh)
    out = pl.pallas_call(
        kernel2,
        out_shape=jax.ShapeDtypeStruct((B, S, E), query.dtype),
        grid_spec=pltpu.PrefetchScalarGridSpec(
            num_scalar_prefetch=0,
            grid=(B, NQ),
            in_specs=[
                qtile_spec,                  # q tile (bf16)
                kvfull_spec,                 # k full (bf16)
                kvfull_spec,                 # v full (bf16)
                qtile_spec,                  # ln tile (f32, residual)
                _const_spec(wo_t), _const_spec(bo),
                _const_spec(w1_t), _const_spec(b1),
                _const_spec(w2_t), _const_spec(b2),
            ],
            out_specs=pl.BlockSpec((pl.Squeezed(), TQ, E), lambda b, qi: (b, qi, 0)),
        ),
        compiler_params=pltpu.CompilerParams(
            dimension_semantics=("parallel", "parallel"),
            vmem_limit_bytes=vmem2),
        cost_estimate=cost2,
    )(q, k, v, ln, wo_t, bo, w1_t, b1, w2_t, b2)

    return out


# --------------------------------------------------------------------------
# Pure-JAX reference (mirrors the PyTorch forward, f32 throughout).
# --------------------------------------------------------------------------
def _reference_forward(query, params, *, num_heads):
    B, S, E = query.shape
    Dh = E // num_heads
    x = query.astype(jnp.float32)
    mu = jnp.mean(x, axis=-1, keepdims=True)
    var = jnp.mean((x - mu) ** 2, axis=-1, keepdims=True)
    ln = (x - mu) / jnp.sqrt(var + 1e-5) * params['ln_gamma'] + params['ln_beta']
    qkv = ln @ params['in_proj_w'].T + params['in_proj_b']
    q, k, v = jnp.split(qkv, 3, axis=-1)
    qh = q.reshape(B, S, num_heads, Dh)
    kh = k.reshape(B, S, num_heads, Dh)
    vh = v.reshape(B, S, num_heads, Dh)
    s = jnp.einsum('bqhd,bkhd->bhqk', qh, kh) / jnp.sqrt(Dh)
    p = jax.nn.softmax(s, axis=-1)
    ctx = jnp.einsum('bhqk,bkhd->bqhd', p, vh).reshape(B, S, E)
    attn = ctx @ params['out_proj_w'].T + params['out_proj_b']
    y = attn + ln
    h1 = jax.nn.gelu(y @ params['w1'].T + params['b1'], approximate=False)
    ff = h1 @ params['w2'].T + params['b2']
    return ff + y


if __name__ == "__main__":
    # Small shapes consistent with the module's forward.
    B, S, E, H, F = 2, 8, 32, 4, 64

    key = jax.random.PRNGKey(0)
    ks = jax.random.split(key, 10)

    params = {
        'ln_gamma':   jnp.ones((E,), jnp.float32),
        'ln_beta':    jnp.zeros((E,), jnp.float32),
        'in_proj_w':  0.1 * jax.random.normal(ks[0], (3 * E, E), jnp.float32),
        'in_proj_b':  0.1 * jax.random.normal(ks[1], (3 * E,), jnp.float32),
        'out_proj_w': 0.1 * jax.random.normal(ks[2], (E, E), jnp.float32),
        'out_proj_b': 0.1 * jax.random.normal(ks[3], (E,), jnp.float32),
        'w1':         0.1 * jax.random.normal(ks[4], (F, E), jnp.float32),
        'b1':         0.1 * jax.random.normal(ks[5], (F,), jnp.float32),
        'w2':         0.1 * jax.random.normal(ks[6], (E, F), jnp.float32),
        'b2':         0.1 * jax.random.normal(ks[7], (E,), jnp.float32),
    }

    query = jax.random.normal(ks[8], (B, S, E), jnp.float32)

    out = attention_wrapper_forward(query, params, num_heads=H)
    out = jax.block_until_ready(out)

    ref = _reference_forward(query, params, num_heads=H)
    assert out.shape == (B, S, E)
    # bf16 MXU operands (f32 accumulation) -> looser tolerance than pure f32.
    assert jnp.allclose(out, ref, atol=5e-2, rtol=5e-2), "mismatch vs reference"

    # TODO(synk): cross-attention path (pre_attention_kv_norm + key_padding_mask)
    # not exercised here; self-attention branch of the module is implemented.
    print("KERNEL_OK")
</pallas_src>

<mosaic_0001>
module attributes {stable_mosaic.version = 11 : i64} {
  func.func @_ln_qkv_kernel(%arg0: i32, %arg1: memref<1x8x32xf32, #tpu.memory_space<vmem>>, %arg2: memref<1x32xf32, #tpu.memory_space<vmem>>, %arg3: memref<1x32xf32, #tpu.memory_space<vmem>>, %arg4: memref<32x32xbf16, #tpu.memory_space<vmem>>, %arg5: memref<1x32xf32, #tpu.memory_space<vmem>>, %arg6: memref<32x32xbf16, #tpu.memory_space<vmem>>, %arg7: memref<1x32xf32, #tpu.memory_space<vmem>>, %arg8: memref<32x32xbf16, #tpu.memory_space<vmem>>, %arg9: memref<1x32xf32, #tpu.memory_space<vmem>>, %arg10: memref<1x8x32xf32, #tpu.memory_space<vmem>>, %arg11: memref<1x8x32xbf16, #tpu.memory_space<vmem>>, %arg12: memref<1x8x32xbf16, #tpu.memory_space<vmem>>, %arg13: memref<1x8x32xbf16, #tpu.memory_space<vmem>>) attributes {dimension_semantics = [#tpu.dimension_semantics<parallel>], iteration_bounds = array<i64: 2>, scalar_prefetch = 0 : i64, scratch_operands = 0 : i64, tpu.core_type = #tpu.core_type<tc>, window_params = [{transform_indices = @transform_0, window_bounds = array<i64: 1, 8, 32>}, {pipeline_mode = #tpu.pipeline_mode<synchronous>, transform_indices = @transform_1, window_bounds = array<i64: 1, 32>}, {pipeline_mode = #tpu.pipeline_mode<synchronous>, transform_indices = @transform_2, window_bounds = array<i64: 1, 32>}, {pipeline_mode = #tpu.pipeline_mode<synchronous>, transform_indices = @transform_3, window_bounds = array<i64: 32, 32>}, {pipeline_mode = #tpu.pipeline_mode<synchronous>, transform_indices = @transform_4, window_bounds = array<i64: 1, 32>}, {pipeline_mode = #tpu.pipeline_mode<synchronous>, transform_indices = @transform_5, window_bounds = array<i64: 32, 32>}, {pipeline_mode = #tpu.pipeline_mode<synchronous>, transform_indices = @transform_6, window_bounds = array<i64: 1, 32>}, {pipeline_mode = #tpu.pipeline_mode<synchronous>, transform_indices = @transform_7, window_bounds = array<i64: 32, 32>}, {pipeline_mode = #tpu.pipeline_mode<synchronous>, transform_indices = @transform_8, window_bounds = array<i64: 1, 32>}, {transform_indices = @transform_9, window_bounds = array<i64: 1, 8, 32>}, {transform_indices = @transform_10, window_bounds = array<i64: 1, 8, 32>}, {transform_indices = @transform_11, window_bounds = array<i64: 1, 8, 32>}, {transform_indices = @transform_12, window_bounds = array<i64: 1, 8, 32>}]} {
    %c0 = arith.constant 0 : index
    %c0_0 = arith.constant 0 : index
    %c0_1 = arith.constant 0 : index
    %0 = vector.load %arg1[%c0, %c0_0, %c0_1] : memref<1x8x32xf32, #tpu.memory_space<vmem>>, vector<1x8x32xf32>
    %1 = vector.shape_cast %0 : vector<1x8x32xf32> to vector<8x32xf32>
    %c0_2 = arith.constant 0 : index
    %c0_3 = arith.constant 0 : index
    %2 = vector.load %arg2[%c0_2, %c0_3] : memref<1x32xf32, #tpu.memory_space<vmem>>, vector<1x32xf32>
    %3 = vector.shape_cast %2 : vector<1x32xf32> to vector<32xf32>
    %c0_4 = arith.constant 0 : index
    %c0_5 = arith.constant 0 : index
    %4 = vector.load %arg3[%c0_4, %c0_5] : memref<1x32xf32, #tpu.memory_space<vmem>>, vector<1x32xf32>
    %5 = vector.shape_cast %4 : vector<1x32xf32> to vector<32xf32>
    %cst = arith.constant dense<0.000000e+00> : vector<8xf32>
    %6 = vector.multi_reduction <add>, %1, %cst [1] : vector<8x32xf32> to vector<8xf32>
    %7 = vector.shape_cast %6 : vector<8xf32> to vector<8x1xf32>
    %cst_6 = arith.constant 3.200000e+01 : f32
    %8 = vector.broadcast %cst_6 : f32 to vector<8x1xf32>
    %9 = arith.divf %7, %8 : vector<8x1xf32>
    %10 = vector.broadcast %9 : vector<8x1xf32> to vector<8x32xf32>
    %11 = arith.subf %1, %10 : vector<8x32xf32>
    %12 = arith.mulf %11, %11 : vector<8x32xf32>
    %cst_7 = arith.constant dense<0.000000e+00> : vector<8xf32>
    %13 = vector.multi_reduction <add>, %12, %cst_7 [1] : vector<8x32xf32> to vector<8xf32>
    %14 = vector.shape_cast %13 : vector<8xf32> to vector<8x1xf32>
    %cst_8 = arith.constant 3.200000e+01 : f32
    %15 = vector.broadcast %cst_8 : f32 to vector<8x1xf32>
    %16 = arith.divf %14, %15 : vector<8x1xf32>
    %17 = vector.broadcast %9 : vector<8x1xf32> to vector<8x32xf32>
    %18 = arith.subf %1, %17 : vector<8x32xf32>
    %cst_9 = arith.constant 9.99999974E-6 : f32
    %19 = vector.broadcast %cst_9 : f32 to vector<8x1xf32>
    %20 = arith.addf %16, %19 : vector<8x1xf32>
    %21 = math.rsqrt %20 : vector<8x1xf32>
    %22 = vector.broadcast %21 : vector<8x1xf32> to vector<8x32xf32>
    %23 = arith.mulf %18, %22 : vector<8x32xf32>
    %24 = vector.shape_cast %3 : vector<32xf32> to vector<1x32xf32>
    %25 = vector.broadcast %24 : vector<1x32xf32> to vector<8x32xf32>
    %26 = arith.mulf %23, %25 : vector<8x32xf32>
    %27 = vector.shape_cast %5 : vector<32xf32> to vector<1x32xf32>
    %28 = vector.broadcast %27 : vector<1x32xf32> to vector<8x32xf32>
    %29 = arith.addf %26, %28 : vector<8x32xf32>
    %c0_10 = arith.constant 0 : index
    %c0_11 = arith.constant 0 : index
    %c0_12 = arith.constant 0 : index
    %30 = vector.load %arg10[%c0_10, %c0_11, %c0_12] : memref<1x8x32xf32, #tpu.memory_space<vmem>>, vector<1x8x32xf32>
    %31 = vector.shape_cast %30 : vector<1x8x32xf32> to vector<8x32xf32>
    %32 = vector.shape_cast %29 : vector<8x32xf32> to vector<1x8x32xf32>
    tpu.vector_store %arg10[%c0_10, %c0_11, %c0_12], %32 {strides = array<i32>} : memref<1x8x32xf32, #tpu.memory_space<vmem>>, vector<1x8x32xf32>,
    %33 = arith.truncf %29 : vector<8x32xf32> to vector<8x32xbf16>
    %c0_13 = arith.constant 0 : index
    %c0_14 = arith.constant 0 : index
    %34 = vector.load %arg4[%c0_13, %c0_14] : memref<32x32xbf16, #tpu.memory_space<vmem>>, vector<32x32xbf16>
    %cst_15 = arith.constant dense<0.000000e+00> : vector<8x32xf32>
    %35 = tpu.matmul %33, %34, %cst_15 {dimension_numbers = #tpu.dot_dimension_numbers<[1], [0], [0], [1], [0, 0, 1, 1], [], []>} : vector<8x32xbf16>, vector<32x32xbf16>, vector<8x32xf32> -> vector<8x32xf32>
    %c0_16 = arith.constant 0 : index
    %c0_17 = arith.constant 0 : index
    %36 = vector.load %arg5[%c0_16, %c0_17] : memref<1x32xf32, #tpu.memory_space<vmem>>, vector<1x32xf32>
    %37 = vector.shape_cast %36 : vector<1x32xf32> to vector<32xf32>
    %38 = vector.shape_cast %37 : vector<32xf32> to vector<1x32xf32>
    %39 = vector.broadcast %38 : vector<1x32xf32> to vector<8x32xf32>
    %40 = arith.addf %35, %39 : vector<8x32xf32>
    %c0_18 = arith.constant 0 : index
    %c0_19 = arith.constant 0 : index
    %41 = vector.load %arg6[%c0_18, %c0_19] : memref<32x32xbf16, #tpu.memory_space<vmem>>, vector<32x32xbf16>
    %cst_20 = arith.constant dense<0.000000e+00> : vector<8x32xf32>
    %42 = tpu.matmul %33, %41, %cst_20 {dimension_numbers = #tpu.dot_dimension_numbers<[1], [0], [0], [1], [0, 0, 1, 1], [], []>} : vector<8x32xbf16>, vector<32x32xbf16>, vector<8x32xf32> -> vector<8x32xf32>
    %c0_21 = arith.constant 0 : index
    %c0_22 = arith.constant 0 : index
    %43 = vector.load %arg7[%c0_21, %c0_22] : memref<1x32xf32, #tpu.memory_space<vmem>>, vector<1x32xf32>
    %44 = vector.shape_cast %43 : vector<1x32xf32> to vector<32xf32>
    %45 = vector.shape_cast %44 : vector<32xf32> to vector<1x32xf32>
    %46 = vector.broadcast %45 : vector<1x32xf32> to vector<8x32xf32>
    %47 = arith.addf %42, %46 : vector<8x32xf32>
    %c0_23 = arith.constant 0 : index
    %c0_24 = arith.constant 0 : index
    %48 = vector.load %arg8[%c0_23, %c0_24] : memref<32x32xbf16, #tpu.memory_space<vmem>>, vector<32x32xbf16>
    %cst_25 = arith.constant dense<0.000000e+00> : vector<8x32xf32>
    %49 = tpu.matmul %33, %48, %cst_25 {dimension_numbers = #tpu.dot_dimension_numbers<[1], [0], [0], [1], [0, 0, 1, 1], [], []>} : vector<8x32xbf16>, vector<32x32xbf16>, vector<8x32xf32> -> vector<8x32xf32>
    %c0_26 = arith.constant 0 : index
    %c0_27 = arith.constant 0 : index
    %50 = vector.load %arg9[%c0_26, %c0_27] : memref<1x32xf32, #tpu.memory_space<vmem>>, vector<1x32xf32>
    %51 = vector.shape_cast %50 : vector<1x32xf32> to vector<32xf32>
    %52 = vector.shape_cast %51 : vector<32xf32> to vector<1x32xf32>
    %53 = vector.broadcast %52 : vector<1x32xf32> to vector<8x32xf32>
    %54 = arith.addf %49, %53 : vector<8x32xf32>
    %55 = arith.truncf %40 : vector<8x32xf32> to vector<8x32xbf16>
    %c0_28 = arith.constant 0 : index
    %c0_29 = arith.constant 0 : index
    %c0_30 = arith.constant 0 : index
    %56 = vector.load %arg11[%c0_28, %c0_29, %c0_30] : memref<1x8x32xbf16, #tpu.memory_space<vmem>>, vector<1x8x32xbf16>
    %57 = vector.shape_cast %56 : vector<1x8x32xbf16> to vector<8x32xbf16>
    %58 = vector.shape_cast %55 : vector<8x32xbf16> to vector<1x8x32xbf16>
    tpu.vector_store %arg11[%c0_28, %c0_29, %c0_30], %58 {strides = array<i32>} : memref<1x8x32xbf16, #tpu.memory_space<vmem>>, vector<1x8x32xbf16>,
    %59 = arith.truncf %47 : vector<8x32xf32> to vector<8x32xbf16>
    %c0_31 = arith.constant 0 : index
    %c0_32 = arith.constant 0 : index
    %c0_33 = arith.constant 0 : index
    %60 = vector.load %arg12[%c0_31, %c0_32, %c0_33] : memref<1x8x32xbf16, #tpu.memory_space<vmem>>, vector<1x8x32xbf16>
    %61 = vector.shape_cast %60 : vector<1x8x32xbf16> to vector<8x32xbf16>
    %62 = vector.shape_cast %59 : vector<8x32xbf16> to vector<1x8x32xbf16>
    tpu.vector_store %arg12[%c0_31, %c0_32, %c0_33], %62 {strides = array<i32>} : memref<1x8x32xbf16, #tpu.memory_space<vmem>>, vector<1x8x32xbf16>,
    %63 = arith.truncf %54 : vector<8x32xf32> to vector<8x32xbf16>
    %c0_34 = arith.constant 0 : index
    %c0_35 = arith.constant 0 : index
    %c0_36 = arith.constant 0 : index
    %64 = vector.load %arg13[%c0_34, %c0_35, %c0_36] : memref<1x8x32xbf16, #tpu.memory_space<vmem>>, vector<1x8x32xbf16>
    %65 = vector.shape_cast %64 : vector<1x8x32xbf16> to vector<8x32xbf16>
    %66 = vector.shape_cast %63 : vector<8x32xbf16> to vector<1x8x32xbf16>
    tpu.vector_store %arg13[%c0_34, %c0_35, %c0_36], %66 {strides = array<i32>} : memref<1x8x32xbf16, #tpu.memory_space<vmem>>, vector<1x8x32xbf16>,
    return
  }
  func.func @transform_0(%arg0: i32) -> (i32, i32, i32) {
    %c0_i32 = arith.constant 0 : i32
    %c0_i32_0 = arith.constant 0 : i32
    %c0_i32_1 = arith.constant 0 : i32
    return %arg0, %c0_i32, %c0_i32_0 : i32, i32, i32
  }
  func.func @transform_1(%arg0: i32) -> (i32, i32) {
    %c0_i32 = arith.constant 0 : i32
    %c0_i32_0 = arith.constant 0 : i32
    %c0_i32_1 = arith.constant 0 : i32
    return %c0_i32, %c0_i32_0 : i32, i32
  }
  func.func @transform_2(%arg0: i32) -> (i32, i32) {
    %c0_i32 = arith.constant 0 : i32
    %c0_i32_0 = arith.constant 0 : i32
    %c0_i32_1 = arith.constant 0 : i32
    return %c0_i32, %c0_i32_0 : i32, i32
  }
  func.func @transform_3(%arg0: i32) -> (i32, i32) {
    %c0_i32 = arith.constant 0 : i32
    %c0_i32_0 = arith.constant 0 : i32
    %c0_i32_1 = arith.constant 0 : i32
    return %c0_i32, %c0_i32_0 : i32, i32
  }
  func.func @transform_4(%arg0: i32) -> (i32, i32) {
    %c0_i32 = arith.constant 0 : i32
    %c0_i32_0 = arith.constant 0 : i32
    %c0_i32_1 = arith.constant 0 : i32
    return %c0_i32, %c0_i32_0 : i32, i32
  }
  func.func @transform_5(%arg0: i32) -> (i32, i32) {
    %c0_i32 = arith.constant 0 : i32
    %c0_i32_0 = arith.constant 0 : i32
    %c0_i32_1 = arith.constant 0 : i32
    return %c0_i32, %c0_i32_0 : i32, i32
  }
  func.func @transform_6(%arg0: i32) -> (i32, i32) {
    %c0_i32 = arith.constant 0 : i32
    %c0_i32_0 = arith.constant 0 : i32
    %c0_i32_1 = arith.constant 0 : i32
    return %c0_i32, %c0_i32_0 : i32, i32
  }
  func.func @transform_7(%arg0: i32) -> (i32, i32) {
    %c0_i32 = arith.constant 0 : i32
    %c0_i32_0 = arith.constant 0 : i32
    %c0_i32_1 = arith.constant 0 : i32
    return %c0_i32, %c0_i32_0 : i32, i32
  }
  func.func @transform_8(%arg0: i32) -> (i32, i32) {
    %c0_i32 = arith.constant 0 : i32
    %c0_i32_0 = arith.constant 0 : i32
    %c0_i32_1 = arith.constant 0 : i32
    return %c0_i32, %c0_i32_0 : i32, i32
  }
  func.func @transform_9(%arg0: i32) -> (i32, i32, i32) {
    %c0_i32 = arith.constant 0 : i32
    %c0_i32_0 = arith.constant 0 : i32
    %c0_i32_1 = arith.constant 0 : i32
    return %arg0, %c0_i32, %c0_i32_0 : i32, i32, i32
  }
  func.func @transform_10(%arg0: i32) -> (i32, i32, i32) {
    %c0_i32 = arith.constant 0 : i32
    %c0_i32_0 = arith.constant 0 : i32
    %c0_i32_1 = arith.constant 0 : i32
    return %arg0, %c0_i32, %c0_i32_0 : i32, i32, i32
  }
  func.func @transform_11(%arg0: i32) -> (i32, i32, i32) {
    %c0_i32 = arith.constant 0 : i32
    %c0_i32_0 = arith.constant 0 : i32
    %c0_i32_1 = arith.constant 0 : i32
    return %arg0, %c0_i32, %c0_i32_0 : i32, i32, i32
  }
  func.func @transform_12(%arg0: i32) -> (i32, i32, i32) {
    %c0_i32 = arith.constant 0 : i32
    %c0_i32_0 = arith.constant 0 : i32
    %c0_i32_1 = arith.constant 0 : i32
    return %arg0, %c0_i32, %c0_i32_0 : i32, i32, i32
  }
}

</mosaic_0001>

<bundles_post_ra>
// kernel: tpu_custom_call.1
= control target key start
LH: loop header
LB: loop body
LE: loop exit
PB: predicated region body
PF: predicated region fallthrough
CT: control target
= control target key end

     0   :  { %s1925_s0 = inlined_call_operand.hbm [shape: f32[2,8,32], index: 0, kind: input, shape index: {}]   ;;  %s1926_s1 = inlined_call_operand.vmem [shape: f32[1,32], index: 1, kind: input, shape index: {}]   ;;  %s1927_s2 = inlined_call_operand.vmem [shape: f32[1,32], index: 2, kind: input, shape index: {}]   ;;  %s1928_s3 = inlined_call_operand.hbm [shape: bf16[32,32], index: 3, kind: input, shape index: {}]   ;;  %s1929_s4 = inlined_call_operand.hbm [shape: f32[1,32], index: 4, kind: input, shape index: {}]   ;;  %s1930_s5 = inlined_call_operand.vmem [shape: bf16[32,32], index: 5, kind: input, shape index: {}]   ;;  %s1931_s6 = inlined_call_operand.vmem [shape: f32[1,32], index: 6, kind: input, shape index: {}]   ;;  %s1932_s7 = inlined_call_operand.hbm [shape: bf16[32,32], index: 7, kind: input, shape index: {}]   ;;  %s1933_s8 = inlined_call_operand.vmem [shape: f32[1,32], index: 8, kind: input, shape index: {}]   ;;  %s1934_s9 = inlined_call_operand.hbm [shape: f32[2,8,32], index: 9, kind: output, shape index: {0}]   ;;  %s1935_s10 = inlined_call_operand.hbm [shape: bf16[2,8,32], index: 10, kind: output, shape index: {1}]   ;;  %s1936_s11 = inlined_call_operand.hbm [shape: bf16[2,8,32], index: 11, kind: output, shape index: {2}]   ;;  %s1937_s12 = inlined_call_operand.hbm [shape: bf16[2,8,32], index: 12, kind: output, shape index: {3}]  }
   0x1   :  { %1947 = sst [smem:[#allocation24_spill]] %s1925_s0 }
   0x2   :  { %1948 = sst [smem:[#allocation25_spill]] %s1926_s1 }
   0x3   :  { %1949 = sst [smem:[#allocation26_spill]] %s1927_s2 }
   0x4   :  { %1950 = sst [smem:[#allocation27_spill]] %s1928_s3 }
   0x5   :  { %1951 = sst [smem:[#allocation28_spill]] %s1933_s8 }
   0x6   :  { %1952 = sst [smem:[#allocation29_spill]] %s1935_s10 }
   0x7   :  { %1953 = sst [smem:[#allocation30_spill]] %s1936_s11 }
   0x8   :  { %1954 = sst [smem:[#allocation31_spill]] %s1937_s12 }
   0x9   :  { %18 = vsyncpa [#allocation3], 0 }
   0xa   :  { %20 = vsyncpa [#allocation3 + $0x1], 0 }
   0xb   :  { %21 = vsyncpa [#allocation6], 0 }
   0xc   :  { %22 = vsyncpa [#allocation9], 0 }
   0xd   :  { %23 = vsyncpa [#allocation4], 0 }
   0xe   :  { %25 = vsyncpa [#allocation4 + $0x1], 0 }
   0xf   :  { %26 = vsyncpa [#allocation12], 0 }
  0x10   :  { %28 = vsyncpa [#allocation12 + $0x1], 0 }
  0x11   :  { %29 = vsyncpa [#allocation15], 0 }
  0x12   :  { %31 = vsyncpa [#allocation15 + $0x1], 0  ;;  %s1530_s21 = smov 0   ;;  %s1532_s22 = smov 0  }
  0x13   :  { %s1534_s23 = smov 0   ;;  %s1536_s24 = smov 0  }
  0x14 LB: > { %1955 = sst [smem:[#allocation22_spill]] %s1439_s21  ;;  %s1551_s25 = sadd.s32 4294967295, %s1451_s24   ;;  %s1451_s24 = sphi %s1536_s24, %s1988_s24   ;;  %s1447_s23 = sphi %s1534_s23, %s1987_s23   ;;  %s1443_s22 = sphi %s1532_s22, %s1986_s22   ;;  %s1439_s21 = sphi %s1530_s21, %s1985_s21  }
  0x15   : > { %s1938_s26 = sadd.s32 4294967294, %s1451_s24   ;;  %p57_p0 = scmp.ne.s32.totalorder %s1443_s22, %s1439_s21 }
  0x16   : > { %p1941_p1 = scmp.eq.s32.totalorder %s1551_s25, 0  ;;  %p255_p3 = scmp.eq.s32.totalorder %s1938_s26, 1 }
  0x17   : > { %p994_p5 = scmp.ge.s32.totalorder %s1451_s24, 1  ;;  %p340_p7 = scmp.lt.s32.totalorder %s1451_s24, 3 }
  0x18   : > { %p1562_p4 = por %p1941_p1, %p57_p0  ;;  %p1567_p6 = por %p255_p3, %p57_p0 }
  0x19   : > { %p1572_p8 = pnand %p994_p5, %p340_p7  ;;  %s1453_s30 = smov [#allocation5]  }
  0x1a   : > { %s1956_s27 = scalar_select %p1562_p4, 1, 0 }
  0x1b   : > { %s1957_s28 = scalar_select %p1567_p6, 1, 0 }
  0x1c   : > { %s1959_s29 = scalar_select %p1572_p8, 1, 0 }
  0x1d   : > { %1958 = sst [smem:[#allocation23_spill]] %s1957_s28  ;;  %s358_s13 = sshll.u32 %s1453_s30, 4  ;;  %s1576_s13 = int_to_ptr.vmem [resolvable:$true] %s358_s13 }
  0x1e   : > { %p1089_p9 = pneg %p1572_p8  ;;  %s1454_s15 = smov [#allocation7]  }
  0x1f   : > { %s372_s16 = sshll.u32 %s1454_s15, 4  ;;  %s1455_s17 = smov [#allocation8]   ;;  %s1587_s16 = int_to_ptr.vmem [resolvable:$true] %s372_s16 }
  0x20   : > { %p1583_p11 = pnand %p1089_p9, %p1941_p1  ;;  %s1589_s18 = sshll.u32 %s1455_s17, 4  ;;  %s389_s18 = int_to_ptr.vmem [resolvable:$true] %s1589_s18 }
  0x21   : > { %s1961_s3 = sld [smem:[#allocation27_spill]] }
  0x22   : > { %p1599_p13 = pneg %p1583_p11 }
  0x27   : > { %s1171_s30 = scalar_lea.hbm %s1961_s3, 256 }
  0x28   : > { %p1172_p12 = scmp.ne.s32.totalorder %s1961_s3, %s1171_s30  ;;  %p1178_p5 = scmp.lt.u32.totalorder %s1171_s30, %s1961_s3 }
  0x2a   : > { %p1174_p0 = pnand %p1599_p13, %p1172_p12 }
  0x2c   : > { %p1175_p3 = pneg %p1174_p0 }
  0x2e   : > { %p1180_p7 = pnand %p1178_p5, %p1175_p3 }
  0x30   : > { %1183 = shalt.err (!%p1180_p7)
}
  0x31   : > { %s1184_s26 = scalar_lea.vmem %s1576_s13, 256  ;;  %p1192_p2 = scmp.lt.s32.totalorder %s1576_s13, %s1576_s13 }
  0x32   : > { %p1185_p9 = scmp.ne.s32.totalorder %s1576_s13, %s1184_s26  ;;  %p1193_p6 = scmp.lt.s32.totalorder %s1184_s26, %s1184_s26 }
  0x34   : > { %p1187_p10 = pnand %p1185_p9, %p1599_p13  ;;  %p1194_p12 = por %p1193_p6, %p1192_p2 }
  0x36   : > { %p1188_p1 = pneg %p1187_p10 }
  0x38   : > { %p1195_p0 = pnand %p1194_p12, %p1188_p1 }
  0x3a   : > { %1198 = shalt.err (!%p1195_p0)
}
  0x3b   : > { %s1456_s28 = smov 64   ;;  %s1457_s19 = smov 4  }
  0x3c   : > { %1092 = dma.hbm_to_vmem [thread:$0]  (!%p1583_p11), %s1961_s3, 256, %s1576_s13, [#allocation6], %s1456_s28, %s1456_s28, %s1457_s19  }
  0x3d   : > { %s1199_s26 = scalar_lea.hbm %s1929_s4, 16 }
  0x3e   : > { %p1200_p1 = scmp.ne.s32.totalorder %s1929_s4, %s1199_s26  ;;  %p1206_p10 = scmp.lt.u32.totalorder %s1199_s26, %s1929_s4 }
  0x40   : > { %p1202_p2 = pnand %p1200_p1, %p1599_p13 }
  0x42   : > { %p1203_p6 = pneg %p1202_p2 }
  0x44   : > { %p1208_p3 = pnand %p1206_p10, %p1203_p6 }
  0x46   : > { %1211 = shalt.err (!%p1208_p3)
}
  0x47   : > { %s1212_s13 = scalar_lea.vmem %s1587_s16, 16  ;;  %s1219_s8 = scalar_lea.vmem %s1587_s16, 32 }
  0x48   : > { %p1213_p5 = scmp.ne.s32.totalorder %s1587_s16, %s1212_s13  ;;  %p1220_p12 = scmp.lt.s32.totalorder %s1587_s16, %s1587_s16 }
  0x49   : > { %p1221_p0 = scmp.lt.s32.totalorder %s1219_s8, %s1212_s13 }
  0x4a   : > { %p1215_p7 = pnand %p1213_p5, %p1599_p13 }
  0x4b   : > { %p1222_p1 = por %p1221_p0, %p1220_p12 }
  0x4c   : > { %p1216_p9 = pneg %p1215_p7 }
  0x4e   : > { %p1223_p2 = pnand %p1222_p1, %p1216_p9 }
  0x50   : > { %1226 = shalt.err (!%p1223_p2)
}
  0x51   : > { %1095 = dma.hbm_to_vmem [thread:$0]  (!%p1583_p11), %s1929_s4, 16, %s1587_s16, [#allocation6]  }
  0x52   : > { %s1227_s30 = scalar_lea.hbm %s1932_s7, 256 }
  0x53   : > { %p1228_p6 = scmp.ne.s32.totalorder %s1932_s7, %s1227_s30  ;;  %p1234_p5 = scmp.lt.u32.totalorder %s1227_s30, %s1932_s7 }
  0x55   : > { %p1230_p10 = pnand %p1228_p6, %p1599_p13 }
  0x57   : > { %p1231_p3 = pneg %p1230_p10 }
  0x59   : > { %p1236_p7 = pnand %p1234_p5, %p1231_p3 }
  0x5b   : > { %1239 = shalt.err (!%p1236_p7)
}
  0x5c   : > { %s1240_s8 = scalar_lea.vmem %s389_s18, 256  ;;  %p1248_p1 = scmp.lt.s32.totalorder %s389_s18, %s389_s18 }
  0x5d   : > { %p1241_p9 = scmp.ne.s32.totalorder %s389_s18, %s1240_s8  ;;  %p1249_p2 = scmp.lt.s32.totalorder %s1240_s8, %s1240_s8 }
  0x5f   : > { %p1243_p12 = pnand %p1241_p9, %p1599_p13  ;;  %p1250_p4 = por %p1249_p2, %p1248_p1 }
  0x61   : > { %p1244_p0 = pneg %p1243_p12 }
  0x63   : > { %p1251_p8 = pnand %p1250_p4, %p1244_p0 }
  0x65   : > { %1254 = shalt.err (!%p1251_p8)
}
  0x66   : > { %1098 = dma.hbm_to_vmem [thread:$0]  (!%p1583_p11), %s1932_s7, 256, %s389_s18, [#allocation9], %s1456_s28, %s1456_s28, %s1457_s19  }
  0x67   : > { %s1670_s21 = sadd.s32 1, %s1451_s24   ;;  %s44_s11 = sadd.s32 1, %s1447_s23 }
  0x68   : > { %s41_s14 = ssub.s32 %s1451_s24, %s1670_s21  ;;  %p51_p8 = scmp.ne.s32.totalorder %s1447_s23, %s1443_s22 }
  0x69   : > { %p42_p4 = scmp.eq.s32.totalorder %s41_s14, 0  ;;  %p52_p13 = scmp.eq.s32.totalorder %s1451_s24, 0 }
  0x6a   : > { %p1119_p6 = scmp.lt.s32.totalorder %s1451_s24, 2  ;;  %p1963_p3 = scmp.eq.s32.totalorder %s1551_s25, 1 }
  0x6b   : > { %s1680_s12 = scalar_select %p42_p4, %s1447_s23, %s44_s11  }
  0x6c   : > { %p53_p10 = por %p52_p13, %p51_p8  ;;  %p1684_p5 = por %p1963_p3, %p51_p8 }
  0x6d   : > { %s405_s30 = sand.u32 1, %s1447_s23   ;;  %s1000_s15 = sshll.u32 %s1451_s24, 7 }
  0x6e   : > { %s999_s18 = sshll.u32 %s405_s30, 3  ;;  %s1965_s0 = sld [smem:[#allocation24_spill]] }
  0x6f   : > { %s409_s26 = scalar_lea.vmem [#allocation2], %s999_s18  ;;  %p1695_p11 = pnand %p1119_p6, %p53_p10 }
  0x70   : > { %s416_s13 = sshll.u32 %s409_s26, 4  ;;  %s406_s16 = scalar_lea.sflag [#allocation3], %s405_s30  ;;  %s1699_s13 = int_to_ptr.vmem [resolvable:$true] %s416_s13 }
  0x71   : > { %p1257_p9 = pneg %p1695_p11 }
  0x74   : > { %s1693_s17 = scalar_lea.hbm %s1965_s0, %s1000_s15  ;;  %s1260_s15 = scalar_lea.hbm %s1965_s0, 256 }
  0x75   : > { %s1255_s10 = scalar_lea.hbm %s1693_s17, 128  ;;  %p1261_p1 = scmp.lt.u32.totalorder %s1693_s17, %s1965_s0 }
  0x76   : > { %p1256_p7 = scmp.ne.s32.totalorder %s1693_s17, %s1255_s10  ;;  %p1262_p2 = scmp.lt.u32.totalorder %s1260_s15, %s1255_s10 }
  0x77   : > { %p1264_p8 = scmp.lt.u32.totalorder %s1255_s10, %s1693_s17 }
  0x78   : > { %p1258_p12 = pnand %p1257_p9, %p1256_p7  ;;  %p1263_p4 = por %p1262_p2, %p1261_p1 }
  0x7a   : > { %p1259_p0 = pneg %p1258_p12  ;;  %p1265_p13 = por %p1264_p8, %p1263_p4 }
  0x7c   : > { %p1266_p6 = pnand %p1265_p13, %p1259_p0 }
  0x7e   : > { %1269 = shalt.err (!%p1266_p6)
}
  0x7f   : > { %s1270_s30 = scalar_lea.vmem %s1699_s13, 128  ;;  %s1458_s19 = smov [#allocation2]  }
  0x80   : > { %p1271_p10 = scmp.ne.s32.totalorder %s1699_s13, %s1270_s30  ;;  %s1275_s26 = sshll.u32 %s1458_s19, 4  ;;  %s1276_s26 = int_to_ptr.vmem [resolvable:$false] %s1275_s26 }
  0x81   : > { %s1277_s14 = scalar_lea.vmem %s1276_s26, 256  ;;  %p1278_p12 = scmp.lt.s32.totalorder %s1699_s13, %s1276_s26 }
  0x82   : > { %p1273_p3 = pnand %p1271_p10, %p1257_p9  ;;  %p1279_p1 = scmp.lt.s32.totalorder %s1277_s14, %s1270_s30 }
  0x84   : > { %p1274_p7 = pneg %p1273_p3  ;;  %p1280_p2 = por %p1279_p1, %p1278_p12 }
  0x86   : > { %p1281_p4 = pnand %p1280_p2, %p1274_p7 }
  0x88   : > { %1284 = shalt.err (!%p1281_p4)
}
  0x89   : > { %1102 = dma.hbm_to_vmem [thread:$0]  (!%p1695_p11), %s1693_s17, 128, %s1699_s13, %s406_s16  }
  0x8a   : > { %p1967_p0 = scmp.ne.s32.totalorder %s1959_s29, 0 }
  0x8b   : > { %s1729_s10 = sand.u32 (!%p1967_p0), 1, %s1443_s22   ;;  %p1968_p9 = scmp.ne.s32.totalorder (!%p1967_p0), %s1956_s27, 0 }
  0x8c   : > { %425 = sbr.rel (%p1967_p0) target bundleno = 747 (0x2eb), region = 56  ;;  %s1002_s11 = sshll.u32 (!%p1967_p0), %s1729_s10, 3 }
  0x8d   : > { %s428_s15 = scalar_lea.sflag (!%p1967_p0), [#allocation3], %s1729_s10  ;;  %s431_s18 = scalar_lea.vmem (!%p1967_p0), [#allocation2], %s1002_s11 }
  0x93   : > { %1414 = dma.done.wait (%p1968_p9), %s428_s15, 128  }
  0x94   : > { %1416 = vsyncadd (%p1968_p9), %s428_s15, 4294967168  ;;  %p1969_p11 = scmp.eq.s32.totalorder %s1551_s25, 0 }
  0x96   : > { %1418 = dma.done.wait (%p1969_p11), [#allocation6], 272   ;;  %p1970_p8 = pmov %p1969_p11 }
  0x98   : > { %1420 = vsyncadd (%p1970_p8), [#allocation6], 4294967024  ;;  %p1971_p13 = pmov %p1970_p8 }
  0x99   : > { %p1972_p6 = pmov %p1970_p8 }
  0x9a   : > { %1422 = dma.done.wait (%p1971_p13), [#allocation9], 256  }
  0x9b   : > { %1424 = vsyncadd (%p1972_p6), [#allocation9], 4294967040  ;;  %vm503_vm0 = vcmask 261120   ;;  %v500_v0 = vld [vmem:[%s431_s18] sm:$0xff]  ;;  %v1163_v7 = vld [vmem:[#allocation5] sm:$0xff]   ;;  %v1459_v9 = vmov 0.0  }
  0x9c   : > { %v504_v1 = vsel %vm503_vm0, %v500_v0, 0.0  ;;  %v1164_v8 = vld [vmem:[%s1930_s5] sm:$0xff]   ;;  %1043 = vmatprep.subr.bf16.mxu0 %v1459_v9  ;;  %1051 = vmatprep.subr.bf16.mxu1 %v1459_v9  ;;  %v1165_v10 = vld [vmem:[#allocation5 + $0x8] sm:$0xff]   ;;  %v1166_v11 = vld [vmem:[%s1930_s5 + $0x8] sm:$0xff]   ;;  %vm1460_vm1 = vmmov 0   ;;  %s1973_s1 = sld [smem:[#allocation25_spill]] }
  0x9d   : > { %505 = vadd.xlane.f32.xlu0 %v504_v1  ;;  %1044 = vmatpush3.bf16.msra.mxu0 %v1163_v7  ;;  %s1974_s2 = sld [smem:[#allocation26_spill]]  ;;  %v1167_v21 = vld [vmem:[#allocation8] sm:$0xff]   ;;  %s477_s19 = scalar_lea.vmem [#allocation10], %s1002_s11  ;;  %v1168_v23 = vld [vmem:[#allocation8 + $0x8] sm:$0xff]  }
  0x9e   : > { %1052 = vmatpush3.bf16.msra.mxu1 %v1164_v8  ;;  %1045 = vmatprep.subr.bf16.mxu0 %v1459_v9  ;;  %s1028_s26 = sshll.u32 %s1551_s25, 7  ;;  %s762_s18 = sshll.u32 %s477_s19, 4  ;;  %s763_s18 = int_to_ptr.vmem [resolvable:$true] %s762_s18 }
  0x9f   : > { %1053 = vmatprep.subr.bf16.mxu1 %v1459_v9  ;;  %1047 = vmatprep.mubr.msk.bf16.mxu0 %vm1460_vm1, %v1459_v9  ;;  %s1774_s11 = scalar_lea.hbm %s1934_s9, %s1028_s26  ;;  %s734_s27 = scalar_lea.sflag [#allocation4], %s1729_s10 }
  0xa0   : > { %1055 = vmatprep.mubr.msk.bf16.mxu1 %vm1460_vm1, %v1459_v9  ;;  %s1285_s29 = scalar_lea.vmem %s763_s18, 128  ;;  %s1461_s17 = smov [#allocation10]  }
  0xa1   : > { %1046 = vmatpush3.bf16.msra.mxu0 %v1165_v10  ;;  %p1286_p10 = scmp.ne.s32.totalorder %s763_s18, %s1285_s29  ;;  %s1289_s13 = sshll.u32 %s1461_s17, 4  ;;  %s1290_s13 = int_to_ptr.vmem [resolvable:$false] %s1289_s13 }
  0xa2   : > { %1054 = vmatpush3.bf16.msra.mxu1 %v1166_v11  ;;  %1059 = vmatprep.subr.bf16.mxu0 %v1459_v9  ;;  %v1010_v16 = vld [vmem:[%s1973_s1] ss:$0 sm:$0xff]  ;;  %s1291_s8 = scalar_lea.vmem %s1290_s13, 256  ;;  %p1292_p12 = scmp.lt.s32.totalorder %s763_s18, %s1290_s13 }
  0xa3   : > { %v1011_v18 = vld [vmem:[%s1974_s2] ss:$0 sm:$0xff]  ;;  %p1287_p3 = pnand %p1286_p10, %p1684_p5  ;;  %p1293_p1 = scmp.lt.s32.totalorder %s1291_s8, %s1285_s29 }
  0xa5   : > { %p1288_p7 = pneg %p1287_p3  ;;  %p1294_p2 = por %p1293_p1, %p1292_p12 }
  0xa7   : > { %p1295_p4 = pnand %p1294_p2, %p1288_p7 }
 0x12a   : > { %v506_v2 = vpop.xlane.xlu0 %505 }
 0x12b   : > { %v508_v3 = vmul.f32 0.03125, %v506_v2 }
 0x12d   : > { %v509_v4 = vsub.f32 %v500_v0, %v508_v3 }
 0x12f   : > { %v510_v5 = vmul.f32 %v509_v4, %v509_v4 }
 0x131   : > { %v511_v6 = vsel %vm503_vm0, %v510_v5, 0.0 }
 0x132   : > { %512 = vadd.xlane.f32.xlu0 %v511_v6 }
 0x1bf   : > { %v513_v12 = vpop.xlane.xlu0 %512 }
 0x1c0   : > { %v514_v13 = vmul.f32 0.03125, %v513_v12 }
 0x1c2   : > { %v515_v14 = vadd.f32 1e-05, %v514_v13 }
 0x1c4   : > { %1169 = vrsqrt.f32 %v515_v14 }
 0x1ce   : > { %v1170_v15 = vpop.eup %1169 }
 0x1cf   : > { %v517_v17 = vmul.f32 %v1170_v15, %v509_v4 }
 0x1d1   : > { %v524_v19 = vmul.f32 %v1010_v16, %v517_v17 }
 0x1d3   : > { %v531_v20 = vadd.f32 %v1011_v18, %v524_v19 }
 0x1d5   : > { %v533_v22 = vpack.c.bf16 %v531_v20, %v531_v20  ;;  %532 = vst.msk [vmem:[%s477_s19] sm:$0xff] %vm503_vm0, %v531_v20 }
 0x1d7   : > { %1048 = vmatmul.mubr.msk.bf16.vlgmr.msra.gmra.mrb[0].mxu0 %vm503_vm0, %v533_v22  ;;  %1056 = vmatmul.mubr.msk.bf16.vlgmr.msra.gmra.mrb[0].mxu1 %vm503_vm0, %v533_v22 }
 0x1d8   : > { %1060 = vmatpush3.bf16.msra.mxu0 %v1167_v21  ;;  %1063 = vmatprep.mubr.msk.bf16.mxu0 %vm1460_vm1, %v1459_v9 }
 0x1d9   : > { %1061 = vmatprep.subr.bf16.mxu0 %v1459_v9 }
 0x1dc   : > { %1062 = vmatpush3.bf16.msra.mxu0 %v1168_v23 }
 0x1df   : > { %1064 = vmatmul.mubr.msk.bf16.vlgmr.msra.gmra.mrb[4].mxu0 %vm503_vm0, %v533_v22 }
 0x1e0   : > { %1298 = shalt.err (!%p1295_p4)
}
 0x1e1   : > { %s1299_s16 = scalar_lea.hbm %s1774_s11, 128  ;;  %s1303_s19 = scalar_lea.hbm %s1934_s9, 256 }
 0x1e2   : > { %p1300_p0 = scmp.ne.s32.totalorder %s1774_s11, %s1299_s16  ;;  %p1304_p8 = scmp.lt.u32.totalorder %s1774_s11, %s1934_s9 }
 0x1e3   : > { %p1305_p13 = scmp.lt.u32.totalorder %s1303_s19, %s1299_s16  ;;  %p1307_p10 = scmp.lt.u32.totalorder %s1299_s16, %s1774_s11 }
 0x1e4   : > { %p1301_p9 = pnand %p1300_p0, %p1684_p5 }
 0x1e5   : > { %p1306_p6 = por %p1305_p13, %p1304_p8 }
 0x1e6   : > { %p1302_p11 = pneg %p1301_p9 }
 0x1e7   : > { %p1308_p3 = por %p1307_p10, %p1306_p6 }
 0x1e9   : > { %p1309_p7 = pnand %p1308_p3, %p1302_p11 }
 0x1eb   : > { %1312 = shalt.err (!%p1309_p7)
}
 0x1ec   : > { %1081 = dma.vmem_to_hbm [thread:$0]  (%p1684_p5), %s763_s18, 128, %s1774_s11, %s734_s27   ;;  %v1012_v24 = vld [vmem:[#allocation7] ss:$0 sm:$0xff]  ;;  %vm727_vm2 = vcmask 257024  }
 0x1ed   : > { %s1795_s15 = sshll.u32 %s1729_s10, 2  ;;  %v1016_v25 = vld [vmem:[%s1931_s6] ss:$0 sm:$0xff]  ;;  %s738_s13 = sand.u32 1, %s1551_s25  }
 0x1ee   : > { %s1802_s8 = sshll.u32 %s1551_s25, 6  ;;  %s484_s16 = scalar_lea.vmem [#allocation11], %s1795_s15 }
 0x1ef   : > { %s775_s28 = sshll.u32 %s484_s16, 4  ;;  %s491_s11 = scalar_lea.vmem [#allocation13], %s1795_s15  ;;  %s1812_s28 = int_to_ptr.vmem [resolvable:$true] %s775_s28 }
 0x1f0   : > { %s788_s18 = sshll.u32 %s491_s11, 4  ;;  %s1975_s30 = sld [smem:[#allocation29_spill]]  ;;  %s1820_s18 = int_to_ptr.vmem [resolvable:$true] %s788_s18 }
 0x1f1   : > { %s1976_s29 = sld [smem:[#allocation30_spill]]  ;;  %s1977_s27 = sld [smem:[#allocation28_spill]] }
 0x1f2   : > { %s1827_s1 = scalar_lea.sflag [#allocation12], %s738_s13  ;;  %s1313_s2 = scalar_lea.vmem %s1812_s28, 64 }
 0x1f3   : > { %p1314_p12 = scmp.ne.s32.totalorder %s1812_s28, %s1313_s2  ;;  %s1462_s26 = smov [#allocation11]  }
 0x1f4   : > { %s1317_s14 = sshll.u32 %s1462_s26, 4  ;;  %s1318_s14 = int_to_ptr.vmem [resolvable:$false] %s1317_s14 }
 0x1f5   : > { %p1315_p1 = pnand %p1314_p12, %p1684_p5  ;;  %s1319_s3 = scalar_lea.vmem %s1318_s14, 128 }
 0x1f6   : > { %s1810_s19 = scalar_lea.hbm %s1975_s30, %s1802_s8  ;;  %p1320_p4 = scmp.lt.s32.totalorder %s1812_s28, %s1318_s14 }
 0x1f7   : > { %s1818_s17 = scalar_lea.hbm %s1976_s29, %s1802_s8  ;;  %v1020_v38 = vld [vmem:[%s1977_s27] ss:$0 sm:$0xff]  ;;  %p1316_p2 = pneg %p1315_p1 }
 0x1f8   : > { %p1321_p0 = scmp.lt.s32.totalorder %s1319_s3, %s1313_s2 }
 0x1fa   : > { %p1322_p9 = por %p1321_p0, %p1320_p4 }
 0x1fc   : > { %p1323_p11 = pnand %p1322_p9, %p1316_p2 }
 0x2aa   : > { %v594_v26 = vpop.f32.mrb[0].mxu0  ;;  %v657_v27 = vpop.f32.mrb[0].mxu1 }
 0x2ab   : > { %v595_v28 = vadd.f32 %v1012_v24, %v594_v26  ;;  %v658_v29 = vadd.f32 %v1016_v25, %v657_v27  ;;  %v1049_v30 = vpop.f32.mrb[1].mxu0  ;;  %v1057_v31 = vpop.f32.mrb[1].mxu1 }
 0x2ac   : > { %v597_v32 = vpop.f32.mrb[2].mxu0  ;;  %v660_v33 = vpop.f32.mrb[2].mxu1 }
 0x2ad   : > { %v726_v34 = vpack.c.bf16 %v595_v28, %v595_v28  ;;  %v729_v35 = vpack.c.bf16 %v658_v29, %v658_v29  ;;  %v1050_v36 = vpop.f32.mrb[3].mxu0  ;;  %v1058_v37 = vpop.f32.mrb[3].mxu1 }
 0x2af   : > { %728 = vst.msk [vmem:[%s484_s16] sm:$0xf] %vm727_vm2, %v726_v34  ;;  %730 = vst.msk [vmem:[%s491_s11] sm:$0xf] %vm727_vm2, %v729_v35 }
 0x2b0   : > { %1326 = shalt.err (!%p1323_p11)
}
 0x2b1   : > { %s1327_s0 = scalar_lea.hbm %s1810_s19, 64  ;;  %s1331_s11 = scalar_lea.hbm %s1975_s30, 128 }
 0x2b2   : > { %p1328_p8 = scmp.ne.s32.totalorder %s1810_s19, %s1327_s0  ;;  %p1332_p10 = scmp.lt.u32.totalorder %s1810_s19, %s1975_s30 }
 0x2b3   : > { %p1333_p3 = scmp.lt.u32.totalorder %s1331_s11, %s1327_s0  ;;  %p1335_p12 = scmp.lt.u32.totalorder %s1327_s0, %s1810_s19 }
 0x2b4   : > { %p1329_p13 = pnand %p1328_p8, %p1684_p5 }
 0x2b5   : > { %p1334_p7 = por %p1333_p3, %p1332_p10 }
 0x2b6   : > { %p1330_p6 = pneg %p1329_p13 }
 0x2b7   : > { %p1336_p1 = por %p1335_p12, %p1334_p7 }
 0x2b9   : > { %p1337_p2 = pnand %p1336_p1, %p1330_p6 }
 0x2bb   : > { %1340 = shalt.err (!%p1337_p2)
}
 0x2bc   : > { %1082 = dma.vmem_to_hbm [thread:$0]  (%p1684_p5), %s1812_s28, 64, %s1810_s19, %s1827_s1  }
 0x2bd   : > { %s1341_s2 = scalar_lea.vmem %s1820_s18, 64  ;;  %s1463_s3 = smov [#allocation13]  }
 0x2be   : > { %p1342_p4 = scmp.ne.s32.totalorder %s1820_s18, %s1341_s2  ;;  %s1345_s26 = sshll.u32 %s1463_s3, 4  ;;  %s1346_s26 = int_to_ptr.vmem [resolvable:$false] %s1345_s26 }
 0x2bf   : > { %s1347_s14 = scalar_lea.vmem %s1346_s26, 128  ;;  %p1348_p11 = scmp.lt.s32.totalorder %s1820_s18, %s1346_s26 }
 0x2c0   : > { %p1343_p0 = pnand %p1342_p4, %p1684_p5  ;;  %p1349_p8 = scmp.lt.s32.totalorder %s1347_s14, %s1341_s2 }
 0x2c2   : > { %p1344_p9 = pneg %p1343_p0  ;;  %p1350_p13 = por %p1349_p8, %p1348_p11 }
 0x2c4   : > { %p1351_p6 = pnand %p1350_p13, %p1344_p9 }
 0x2c6   : > { %1354 = shalt.err (!%p1351_p6)
}
 0x2c7   : > { %s1355_s28 = scalar_lea.hbm %s1818_s17, 64  ;;  %s1359_s13 = scalar_lea.hbm %s1976_s29, 128 }
 0x2c8   : > { %p1356_p10 = scmp.ne.s32.totalorder %s1818_s17, %s1355_s28  ;;  %p1360_p12 = scmp.lt.u32.totalorder %s1818_s17, %s1976_s29 }
 0x2c9   : > { %p1361_p1 = scmp.lt.u32.totalorder %s1359_s13, %s1355_s28  ;;  %p1363_p4 = scmp.lt.u32.totalorder %s1355_s28, %s1818_s17 }
 0x2ca   : > { %p1357_p3 = pnand %p1356_p10, %p1684_p5 }
 0x2cb   : > { %p1362_p2 = por %p1361_p1, %p1360_p12 }
 0x2cc   : > { %p1358_p7 = pneg %p1357_p3 }
 0x2cd   : > { %p1364_p0 = por %p1363_p4, %p1362_p2 }
 0x2cf   : > { %p1365_p9 = pnand %p1364_p0, %p1358_p7 }
 0x2d1   : > { %1368 = shalt.err (!%p1365_p9)
}
 0x2d2   : > { %1083 = dma.vmem_to_hbm [thread:$0]  (%p1684_p5), %s1820_s18, 64, %s1818_s17, %s1827_s1   ;;  %v720_v39 = vpop.f32.mrb[4].mxu0 }
 0x2d3   : > { %s498_s25 = scalar_lea.vmem [#allocation14], %s1795_s15  ;;  %v721_v40 = vadd.f32 %v1020_v38, %v720_v39  ;;  %v1065_v41 = vpop.f32.mrb[5].mxu0  ;;  %s1978_s26 = sld [smem:[#allocation31_spill]] }
 0x2d4   : > { %s801_s27 = sshll.u32 %s498_s25, 4  ;;  %v723_v42 = vpop.f32.mrb[6].mxu0  ;;  %s749_s1 = scalar_lea.sflag [#allocation15], %s1729_s10  ;;  %s1880_s27 = int_to_ptr.vmem [resolvable:$true] %s801_s27 }
 0x2d5   : > { %v731_v43 = vpack.c.bf16 %v721_v40, %v721_v40  ;;  %v1066_v44 = vpop.f32.mrb[7].mxu0  ;;  %s1369_s15 = scalar_lea.vmem %s1880_s27, 64  ;;  %s1464_s18 = smov [#allocation14]  }
 0x2d6   : > { %p1370_p11 = scmp.ne.s32.totalorder %s1880_s27, %s1369_s15  ;;  %s1373_s17 = sshll.u32 %s1464_s18, 4  ;;  %s1374_s17 = int_to_ptr.vmem [resolvable:$false] %s1373_s17 }
 0x2d7   : > { %732 = vst.msk [vmem:[%s498_s25] sm:$0xf] %vm727_vm2, %v731_v43  ;;  %s1375_s28 = scalar_lea.vmem %s1374_s17, 128  ;;  %p1376_p6 = scmp.lt.s32.totalorder %s1880_s27, %s1374_s17 }
 0x2d8   : > { %p1371_p8 = pnand %p1370_p11, %p1684_p5  ;;  %p1377_p10 = scmp.lt.s32.totalorder %s1375_s28, %s1369_s15 }
 0x2d9   : > { %s1878_s14 = scalar_lea.hbm %s1978_s26, %s1802_s8 }
 0x2da   : > { %p1372_p13 = pneg %p1371_p8  ;;  %p1378_p3 = por %p1377_p10, %p1376_p6 }
 0x2dc   : > { %p1379_p7 = pnand %p1378_p3, %p1372_p13 }
 0x2de   : > { %1382 = shalt.err (!%p1379_p7)
}
 0x2df   : > { %s1383_s10 = scalar_lea.hbm %s1878_s14, 64  ;;  %s1387_s0 = scalar_lea.hbm %s1978_s26, 128 }
 0x2e0   : > { %p1384_p12 = scmp.ne.s32.totalorder %s1878_s14, %s1383_s10  ;;  %p1388_p4 = scmp.lt.u32.totalorder %s1878_s14, %s1978_s26 }
 0x2e1   : > { %p1389_p0 = scmp.lt.u32.totalorder %s1387_s0, %s1383_s10  ;;  %p1391_p11 = scmp.lt.u32.totalorder %s1383_s10, %s1878_s14 }
 0x2e2   : > { %p1385_p1 = pnand %p1384_p12, %p1684_p5 }
 0x2e3   : > { %p1390_p9 = por %p1389_p0, %p1388_p4 }
 0x2e4   : > { %p1386_p2 = pneg %p1385_p1 }
 0x2e5   : > { %p1392_p8 = por %p1391_p11, %p1390_p9 }
 0x2e7   : > { %p1393_p13 = pnand %p1392_p8, %p1386_p2 }
 0x2e9   : > { %1396 = shalt.err (!%p1393_p13)
}
 0x2ea   : > { %1084 = dma.vmem_to_hbm [thread:$0]  (%p1684_p5), %s1880_s27, 64, %s1878_s14, %s749_s1  }
 0x2eb PF: > { %s1979_s11 = sld [smem:[#allocation22_spill]]  ;;  %s1980_s25 = sld [smem:[#allocation23_spill]] }
 0x2ec   : > { %p1982_p10 = scmp.ge.s32.totalorder %s1451_s24, 2 }
 0x2f1   : > { %s813_s2 = sand.u32 1, %s1979_s11   ;;  %p1981_p6 = scmp.ne.s32.totalorder %s1980_s25, 0 }
 0x2f2   : > { %s814_s3 = scalar_lea.sflag [#allocation4], %s813_s2 }
 0x2f3   : > { %p1104_p3 = pnand %p1982_p10, %p1981_p6 }
 0x2f5   : > { %1426 = dma.done.wait (!%p1104_p3), %s814_s3, 128  }
 0x2f6   : > { %1428 = vsyncadd (!%p1104_p3), %s814_s3, 4294967168  ;;  %s1983_s15 = sadd.s32 4294967294, %s1451_s24  }
 0x2f7   : > { %s822_s18 = sand.u32 1, %s1983_s15  }
 0x2f8   : > { %s823_s17 = scalar_lea.sflag [#allocation12], %s822_s18 }
 0x2f9   : > { %1430 = dma.done.wait (!%p1104_p3), %s823_s17, 128  }
 0x2fa   : > { %1432 = vsyncadd (!%p1104_p3), %s823_s17, 4294967168  ;;  %s841_s20 = scalar_lea.sflag [#allocation15], %s813_s2 }
 0x2fb   : > { %1434 = dma.done.wait (!%p1104_p3), %s841_s20, 64  }
 0x2fc   : > { %1436 = vsyncadd (!%p1104_p3), %s841_s20, 4294967232  ;;  %s1984_s27 = smov %s1670_s21  ;;  %p34_p5 = scmp.ge.s32.totalorder %s1670_s21, 4  }
 0x2fd   : > { %s1985_s21 = smov %s1443_s22  ;;  %s1986_s22 = smov %s1447_s23 }
 0x2fe   : > { %s1987_s23 = smov %s1680_s12  ;;  %s1988_s24 = smov %s1984_s27 }
 0x2ff   :  { %36 = sbr.rel (!%p34_p5) target bundleno = 20 (0x14), region = 162 }
 0x306   :  { %846 = vsyncpa [#allocation3], 1 }
 0x307   :  { %848 = vsyncpa [#allocation3 + $0x1], 1 }
 0x308   :  { %849 = vsyncpa [#allocation6], 1 }
 0x309   :  { %850 = vsyncpa [#allocation9], 1 }
 0x30a   :  { %851 = vsyncpa [#allocation4], 1 }
 0x30b   :  { %853 = vsyncpa [#allocation4 + $0x1], 1 }
 0x30c   :  { %854 = vsyncpa [#allocation12], 1 }
 0x30d   :  { %856 = vsyncpa [#allocation12 + $0x1], 1 }
 0x30e   :  { %857 = vsyncpa [#allocation15], 1 }
 0x30f   :  { %859 = vsyncpa [#allocation15 + $0x1], 1 }

</bundles_post_ra>
